<compile_context>
chip_gen: v5e
topology: v5e:2x2
jax: 0.10.0
libtpu: 0.0.40
codegen_flags: <defaults>
</compile_context>

<pallas_src>
from dataclasses import dataclass
from functools import partial

import numpy as np
import jax
import jax.numpy as jnp
from jax.experimental import pallas as pl
from jax.experimental.pallas import tpu as pltpu


# ----------------------------------------------------------------------------
# Parameter / index construction (host-side glue: numpy + jax.random)
# ----------------------------------------------------------------------------
@dataclass
class Deficient:
    split: float = 0.05
    eps_radius: float = 0.02
    eps_angle: float = 0.10


def _make_indexAB(nFeatures):
    if nFeatures % 2 == 0:
        nAnglesAB = int(nFeatures / 2)
        indexA = [[i * 2, i * 2 + 1] for i in range(nAnglesAB)]
        indexB = ([[i * 2 + 1, i * 2 + 2] for i in range(nAnglesAB - 1)]
                  + [[int(np.invert(0)), int(np.invert(nFeatures - 1))]])
    else:
        nAnglesAB = int(nFeatures / 2) + 1
        indexA = ([[i * 2, i * 2 + 1] for i in range(nAnglesAB - 1)]
                  + [[int(np.invert(nFeatures - 1))] * 2])
        indexB = ([[i * 2 + 1, i * 2 + 2] for i in range(nAnglesAB - 1)]
                  + [[int(np.invert(0))] * 2])
    return indexA, indexB


def clements_index(nFeatures, nLayers):
    indexA, indexB = _make_indexAB(nFeatures)
    indexAB = ([indexA] * 2 + [indexB] * 2) * int(nLayers / 2)
    if nLayers % 2 == 1:
        indexAB += [indexA] * 2
    return np.asarray(indexAB, dtype=np.int32)          # (n_stages, nAngles, 2)


def init_clements_mzi_ps(key, nFeatures, nLayers, deficient):
    """Deterministic synthetic init matching the torch module's shapes."""
    index = clements_index(nFeatures, nLayers)
    L, A, _ = index.shape
    k = jax.random.split(key, 8)
    # ClementsMZI (ModulePSBS) parameters / buffers
    params = jax.random.normal(k[0], (1, L, A), jnp.float32)
    split = jax.random.normal(k[1], (L, A), jnp.float32) * deficient.split
    radius = 1.0 - deficient.eps_radius * jax.random.uniform(k[2], (L, nFeatures))
    phi = deficient.eps_angle * (2.0 * jax.random.uniform(k[3], (L, nFeatures)) - 1.0)
    atten = np.asarray(radius) * np.exp(1j * np.asarray(phi))            # (L, F)
    # ModulePS parameters / buffers
    ps_params = jnp.zeros((1, nFeatures), jnp.float32)
    ps_radius = 1.0 - deficient.eps_radius * jax.random.uniform(k[4], (nFeatures,))
    ps_phi = deficient.eps_angle * (2.0 * jax.random.uniform(k[5], (nFeatures,)) - 1.0)
    ps_atten = np.asarray(ps_radius) * np.exp(1j * np.asarray(ps_phi))   # (F,)
    return dict(index=index, params=np.asarray(params), split=np.asarray(split),
                atten=atten, ps_params=np.asarray(ps_params), ps_atten=ps_atten)


def build_packed_matrices(p, host_fold=2):
    """Fold each PSBS stage into a complex transfer matrix, fold the ModulePS
    diagonal into the last stage, pre-multiply consecutive stages on the host
    in groups of `host_fold`, pad F for lane density, and pack re/im into real
    (2Fp, 2Fp) blocks.  Returns (m_packed f32, Fp, exact-reference dict)."""
    index, params, split, atten = p["index"], p["params"], p["split"], p["atten"]
    L, A, _ = index.shape
    F = atten.shape[1]

    stages = np.zeros((L, F, F), dtype=np.complex128)
    for l in range(L):
        U = np.eye(F, dtype=np.complex128)
        for a in range(A):
            i, j = int(index[l, a, 0]), int(index[l, a, 1])
            if i < 0 or j < 0:          # padded (bit-inverted) pair -> pass-through
                continue
            theta = float(params[0, l, a])
            s = float(split[l, a])
            t, r = np.cos(np.pi / 4 + s), np.sin(np.pi / 4 + s)
            e = np.exp(1j * theta)
            U[i, i] = t * e
            U[i, j] = 1j * r
            U[j, i] = 1j * r * e
            U[j, j] = t
        stages[l] = np.diag(atten[l]) @ U

    ps_diag = np.exp(1j * p["ps_params"][0]) * p["ps_atten"]            # (F,)

    # Row-vector form: x <- x @ M_l with M_l = U_l^T; fold ModulePS at the end.
    M = np.transpose(stages, (0, 2, 1)).copy()
    M[-1] = M[-1] @ np.diag(ps_diag)

    # Host-fold groups of `host_fold` consecutive stages (application order).
    host_fold = max(1, min(int(host_fold), L))
    groups = []
    for g0 in range(0, L, host_fold):
        G = np.eye(F, dtype=np.complex128)
        for l in range(g0, min(g0 + host_fold, L)):
            G = G @ M[l]
        groups.append(G)
    Mg = np.stack(groups)                                               # (Lg, F, F)

    # Pad F so 2*Fp is a multiple of 128 (lane-dense packed plane).
    Fp = ((F + 63) // 64) * 64
    Mp = np.zeros((Mg.shape[0], Fp, Fp), dtype=np.complex128)
    Mp[:, :F, :F] = Mg                # padded input lanes are zero -> zero pad is exact

    Mre = Mp.real
    Mim = Mp.imag
    top = np.concatenate([Mre, Mim], axis=2)
    bot = np.concatenate([-Mim, Mre], axis=2)
    m_packed = np.concatenate([top, bot], axis=1).astype(np.float32)    # (Lg, 2Fp, 2Fp)

    exact = dict(mats=stages.astype(np.complex128),
                 ps_diag=ps_diag.astype(np.complex128))
    return m_packed, Fp, exact


def pack_field(x_re, x_im, Fp):
    """(B, F) re/im -> lane-dense packed (B, 2*Fp) float32."""
    B, F = x_re.shape
    pad = Fp - F
    xr = jnp.pad(x_re.astype(jnp.float32), ((0, 0), (0, pad)))
    xi = jnp.pad(x_im.astype(jnp.float32), ((0, 0), (0, pad)))
    return jnp.concatenate([xr, xi], axis=1)


# ----------------------------------------------------------------------------
# Pallas kernel: layer-streamed packed-complex matmul chain.
#   grid = (batch_tiles [parallel], layer_blocks [arbitrary])
#   x tile : (TB, 2Fp) f32   resident across the layer axis (init source)
#   m tile : (KL, 2Fp, 2Fp)  bf16, streamed KL layers per grid step
#   o tile : (TB, 2Fp) f32   resident accumulator (output reused; no scratch)
# ----------------------------------------------------------------------------
def clements_ps_kernel(x_ref, m_ref, o_ref):
    @pl.when(pl.program_id(1) == 0)
    def _init():
        o_ref[...] = x_ref[...]

    acc = o_ref[...]                                   # f32 carried field
    for s in range(m_ref.shape[0]):                    # KL unrolled matmuls / step
        acc = jnp.dot(acc.astype(m_ref.dtype), m_ref[s],
                      preferred_element_type=jnp.float32)
    o_ref[...] = acc


def _choose_batch_tile(B, cap=256):
    """Pad B to a multiple of 8 (or of the tile cap) and pick the tile size.
    Cap at 256 so that large batches give >=2 'parallel' tiles for v7x megacore
    and awkward batch sizes never fall back to tiny tiles."""
    Bp = -(-B // 8) * 8
    if Bp <= cap:
        return Bp, Bp
    TB = cap
    Bp = -(-Bp // TB) * TB
    return Bp, TB


def _choose_layer_block(n_layers, f2, itemsize, max_unroll=4, budget_bytes=8 << 20):
    """Largest divisor of n_layers such that the double-buffered M block stays
    within the VMEM budget and the in-kernel unroll stays bounded."""
    per_layer = f2 * f2 * itemsize
    cap = max(1, min(int(max_unroll), budget_bytes // max(1, 2 * per_layer)))
    kl = 1
    for d in range(1, n_layers + 1):
        if n_layers % d == 0 and d <= cap:
            kl = d
    return kl


@partial(jax.jit, static_argnames=("max_layers_per_step",))
def clements_mzi_ps_forward(x_packed, m_packed, max_layers_per_step=4):
    """x_packed: (B, 2Fp) f32 = [x_re | x_im]; m_packed: (Lg, 2Fp, 2Fp) bf16/f32.
    Returns packed output (B_padded, 2Fp) f32 = [y_re | y_im]."""
    B, F2 = x_packed.shape
    Lg = m_packed.shape[0]

    Bp, TB = _choose_batch_tile(B)
    if Bp != B:
        x_packed = jnp.pad(x_packed, ((0, Bp - B), (0, 0)))

    itemsize = int(np.dtype(m_packed.dtype).itemsize)
    KL = _choose_layer_block(Lg, F2, itemsize, max_unroll=max_layers_per_step)

    # Explicit VMEM budget: x + out tiles (double-buffered) + M stream block.
    vmem_need = (4 * TB * F2 * 4
                 + 2 * KL * F2 * F2 * itemsize
                 + (2 << 20))
    vmem_limit = int(min(max(vmem_need, 32 << 20), 64 << 20))

    out = pl.pallas_call(
        clements_ps_kernel,
        out_shape=jax.ShapeDtypeStruct((Bp, F2), jnp.float32),
        grid_spec=pltpu.PrefetchScalarGridSpec(
            num_scalar_prefetch=0,
            grid=(Bp // TB, Lg // KL),
            in_specs=[
                pl.BlockSpec((TB, F2), lambda b, l: (b, 0)),
                pl.BlockSpec((KL, F2, F2), lambda b, l: (l, 0, 0)),
            ],
            out_specs=pl.BlockSpec((TB, F2), lambda b, l: (b, 0)),
        ),
        compiler_params=pltpu.CompilerParams(
            dimension_semantics=("parallel", "arbitrary"),
            vmem_limit_bytes=vmem_limit),
    )(x_packed, m_packed)
    return out


# ----------------------------------------------------------------------------
# Exact complex reference (stage-by-stage, PS applied last)
# ----------------------------------------------------------------------------
def reference_forward(x_complex, mats, ps_diag):
    y = x_complex
    for l in range(mats.shape[0]):
        y = y @ mats[l].T
    return y * ps_diag[None, :]


if __name__ == "__main__":
    nFeatures, nLayers, batch = 16, 4, 8
    deficient = Deficient()

    key = jax.random.PRNGKey(0)
    kp, kx = jax.random.split(key)
    params = init_clements_mzi_ps(kp, nFeatures, nLayers, deficient)

    # host_fold=2 pre-multiplies pairs of PSBS stages (8 -> 4 streamed matrices);
    # host_fold >= 2*nLayers collapses a frozen mesh into a single GEMM.
    m_packed, Fp, exact = build_packed_matrices(params, host_fold=2)

    kr, ki = jax.random.split(kx)
    x_re = jax.random.normal(kr, (batch, nFeatures), jnp.float32)
    x_im = jax.random.normal(ki, (batch, nFeatures), jnp.float32)
    x_packed = pack_field(x_re, x_im, Fp)                       # (B, 2Fp) lane-dense

    # bf16 streamed weights, f32 accumulation in-kernel.
    m_dev = jnp.asarray(m_packed, jnp.bfloat16)

    out_packed = clements_mzi_ps_forward(x_packed, m_dev, max_layers_per_step=2)
    jax.block_until_ready(out_packed)

    o_re = np.asarray(out_packed[:batch, :nFeatures])
    o_im = np.asarray(out_packed[:batch, Fp:Fp + nFeatures])

    x_c = np.asarray(x_re).astype(np.complex128) + 1j * np.asarray(x_im)
    ref = reference_forward(x_c, exact["mats"], exact["ps_diag"])

    # bf16 weights + f32 accumulation over the chained mesh -> relaxed tolerance.
    np.testing.assert_allclose(o_re, ref.real, rtol=5e-2, atol=5e-2)
    np.testing.assert_allclose(o_im, ref.imag, rtol=5e-2, atol=5e-2)

    print("KERNEL_OK")
</pallas_src>

<mosaic_0001>
module attributes {stable_mosaic.version = 11 : i64} {
  func.func @clements_ps_kernel(%arg0: i32, %arg1: i32, %arg2: memref<8x128xf32, #tpu.memory_space<vmem>>, %arg3: memref<2x128x128xbf16, #tpu.memory_space<vmem>>, %arg4: memref<8x128xf32, #tpu.memory_space<vmem>>) attributes {dimension_semantics = [#tpu.dimension_semantics<parallel>, #tpu.dimension_semantics<arbitrary>], iteration_bounds = array<i64: 1, 2>, scalar_prefetch = 0 : i64, scratch_operands = 0 : i64, tpu.core_type = #tpu.core_type<tc>, window_params = [{transform_indices = @transform_0, window_bounds = array<i64: 8, 128>}, {transform_indices = @transform_1, window_bounds = array<i64: 2, 128, 128>}, {transform_indices = @transform_2, window_bounds = array<i64: 8, 128>}]} {
    %c0_i32 = arith.constant 0 : i32
    %0 = arith.cmpi eq, %arg1, %c0_i32 : i32
    %1 = arith.extui %0 : i1 to i32
    %c0_i32_0 = arith.constant 0 : i32
    %2 = arith.cmpi ne, %1, %c0_i32_0 : i32
    scf.if %2 {
      %c0_10 = arith.constant 0 : index
      %c0_11 = arith.constant 0 : index
      %13 = vector.load %arg2[%c0_10, %c0_11] : memref<8x128xf32, #tpu.memory_space<vmem>>, vector<8x128xf32>
      %c0_12 = arith.constant 0 : index
      %c0_13 = arith.constant 0 : index
      %14 = vector.load %arg4[%c0_12, %c0_13] : memref<8x128xf32, #tpu.memory_space<vmem>>, vector<8x128xf32>
      tpu.vector_store %arg4[%c0_12, %c0_13], %13 {strides = array<i32>} : memref<8x128xf32, #tpu.memory_space<vmem>>, vector<8x128xf32>,
    } else {
    }
    %c0 = arith.constant 0 : index
    %c0_1 = arith.constant 0 : index
    %3 = vector.load %arg4[%c0, %c0_1] : memref<8x128xf32, #tpu.memory_space<vmem>>, vector<8x128xf32>
    %4 = arith.truncf %3 : vector<8x128xf32> to vector<8x128xbf16>
    %c0_2 = arith.constant 0 : index
    %c0_3 = arith.constant 0 : index
    %c0_4 = arith.constant 0 : index
    %5 = vector.load %arg3[%c0_2, %c0_3, %c0_4] : memref<2x128x128xbf16, #tpu.memory_space<vmem>>, vector<1x128x128xbf16>
    %6 = vector.shape_cast %5 : vector<1x128x128xbf16> to vector<128x128xbf16>
    %cst = arith.constant dense<0.000000e+00> : vector<8x128xf32>
    %7 = tpu.matmul %4, %6, %cst {dimension_numbers = #tpu.dot_dimension_numbers<[1], [0], [0], [1], [0, 0, 1, 1], [], []>} : vector<8x128xbf16>, vector<128x128xbf16>, vector<8x128xf32> -> vector<8x128xf32>
    %8 = arith.truncf %7 : vector<8x128xf32> to vector<8x128xbf16>
    %c1 = arith.constant 1 : index
    %c0_5 = arith.constant 0 : index
    %c0_6 = arith.constant 0 : index
    %9 = vector.load %arg3[%c1, %c0_5, %c0_6] : memref<2x128x128xbf16, #tpu.memory_space<vmem>>, vector<1x128x128xbf16>
    %10 = vector.shape_cast %9 : vector<1x128x128xbf16> to vector<128x128xbf16>
    %cst_7 = arith.constant dense<0.000000e+00> : vector<8x128xf32>
    %11 = tpu.matmul %8, %10, %cst_7 {dimension_numbers = #tpu.dot_dimension_numbers<[1], [0], [0], [1], [0, 0, 1, 1], [], []>} : vector<8x128xbf16>, vector<128x128xbf16>, vector<8x128xf32> -> vector<8x128xf32>
    %c0_8 = arith.constant 0 : index
    %c0_9 = arith.constant 0 : index
    %12 = vector.load %arg4[%c0_8, %c0_9] : memref<8x128xf32, #tpu.memory_space<vmem>>, vector<8x128xf32>
    tpu.vector_store %arg4[%c0_8, %c0_9], %11 {strides = array<i32>} : memref<8x128xf32, #tpu.memory_space<vmem>>, vector<8x128xf32>,
    return
  }
  func.func @transform_0(%arg0: i32, %arg1: i32) -> (i32, i32) {
    %c0_i32 = arith.constant 0 : i32
    %c0_i32_0 = arith.constant 0 : i32
    return %arg0, %c0_i32 : i32, i32
  }
  func.func @transform_1(%arg0: i32, %arg1: i32) -> (i32, i32, i32) {
    %c0_i32 = arith.constant 0 : i32
    %c0_i32_0 = arith.constant 0 : i32
    %c0_i32_1 = arith.constant 0 : i32
    return %arg1, %c0_i32, %c0_i32_0 : i32, i32, i32
  }
  func.func @transform_2(%arg0: i32, %arg1: i32) -> (i32, i32) {
    %c0_i32 = arith.constant 0 : i32
    %c0_i32_0 = arith.constant 0 : i32
    return %arg0, %c0_i32 : i32, i32
  }
}

</mosaic_0001>

<bundles_post_ra>
// kernel: clements_mzi_ps_forward.1
= control target key start
LH: loop header
LB: loop body
LE: loop exit
PB: predicated region body
PF: predicated region fallthrough
CT: control target
= control target key end

     0   :  { %7 = vsyncpa [#allocation3], 0  ;;  %s940_s0 = inlined_call_operand.hbm [shape: f32[8,128], index: 0, kind: input, shape index: {}]   ;;  %s941_s1 = inlined_call_operand.hbm [shape: bf16[4,128,128], index: 1, kind: input, shape index: {}]   ;;  %s942_s2 = inlined_call_operand.hbm [shape: f32[8,128], index: 2, kind: output, shape index: {}]  }
   0x1   :  { %8 = vsyncpa [#allocation6], 0 }
   0x2   :  { %10 = vsyncpa [#allocation6 + $0x1], 0 }
   0x3   :  { %11 = vsyncpa [#allocation4], 0  ;;  %s800_s9 = smov 0   ;;  %s802_s10 = smov 0  }
   0x4   :  { %s804_s11 = smov 0   ;;  %s806_s12 = smov 0  }
   0x5   :  { %s808_s13 = smov 0   ;;  %s810_s14 = smov 0  }
   0x6 LB: > { %s444_s15 = sadd.s32 4294967295, %s779_s14   ;;  %s62_s16 = sadd.s32 1, %s767_s11  ;;  %s779_s14 = sphi %s810_s14, %s17_s14   ;;  %s775_s13 = sphi %s808_s13, %s952_s13   ;;  %s771_s12 = sphi %s806_s12, %s951_s12   ;;  %s767_s11 = sphi %s804_s11, %s950_s11   ;;  %s763_s10 = sphi %s802_s10, %s949_s10   ;;  %s759_s9 = sphi %s800_s9, %s948_s9  }
   0x7   : > { %p69_p0 = scmp.ne.s32.totalorder %s767_s11, %s763_s10  ;;  %p70_p1 = scmp.eq.s32.totalorder %s779_s14, 0 }
   0x8   : > { %p75_p2 = scmp.ne.s32.totalorder %s763_s10, %s759_s9  ;;  %p836_p3 = scmp.eq.s32.totalorder %s444_s15, 0 }
   0x9   : > { %p840_p4 = por %p70_p1, %p69_p0  ;;  %p445_p5 = scmp.ge.s32.totalorder %s779_s14, 1 }
   0xa   : > { %p847_p6 = por %p836_p3, %p75_p2  ;;  %p112_p7 = scmp.lt.s32.totalorder %s779_s14, 3 }
   0xb   : > { %s126_s22 = sshll.u32 %s940_s0, 4  ;;  %s781_s24 = smov [#allocation2]   ;;  %s127_s22 = int_to_ptr.hbm [resolvable:$true] %s126_s22 }
   0xc   : > { %p855_p8 = pnand %p445_p5, %p112_p7  ;;  %s128_s25 = sshll.u32 %s781_s24, 4  ;;  %s129_s25 = int_to_ptr.vmem [resolvable:$true] %s128_s25 }
   0xd   : > { %p577_p10 = scmp.lt.s32.totalorder %s779_s14, 2  ;;  %s26_s27 = sadd.s32 1, %s775_s13 }
   0xe   : > { %p568_p9 = pneg %p855_p8  ;;  %p27_p13 = scmp.ge.s32.totalorder %s26_s27, 2 }
   0xf   : > { %p866_p12 = pnand %p577_p10, %p840_p4  ;;  %s139_s28 = sand.u32 1, %s767_s11  }
  0x10   : > { %p569_p11 = pnand %p568_p9, %p836_p3  ;;  %s541_s29 = sshll.u32 %s775_s13, 7 }
  0x11   : > { %s954_s27 = smov (%p27_p13, %s26_s27), 0  ;;  %s448_s30 = sshll.u32 %s139_s28, 7 }
  0x12   : > { %571 = dma.hbm_to_vmem [thread:$0]  (!%p569_p11), %s127_s22, 128, %s129_s25, [#allocation3]  }
  0x13   : > { %s59_s3 = ssub.s32 %s775_s13, %s954_s27  ;;  %s149_s6 = scalar_lea.hbm %s941_s1, %s541_s29 }
  0x14   : > { %p60_p0 = scmp.eq.s32.totalorder %s59_s3, 0  ;;  %s150_s7 = sshll.u32 %s149_s6, 4  ;;  %s151_s7 = int_to_ptr.hbm [resolvable:$true] %s150_s7 }
  0x15   : > { %s143_s8 = scalar_lea.vmem [#allocation5], %s448_s30  ;;  %s140_s20 = scalar_lea.sflag [#allocation6], %s139_s28 }
  0x16   : > { %s152_s9 = sshll.u32 %s143_s8, 4  ;;  %s782_s21 = smov 64   ;;  %s153_s9 = int_to_ptr.vmem [resolvable:$true] %s152_s9 }
  0x17   : > { %s883_s18 = scalar_select %p60_p0, %s767_s11, %s62_s16  }
  0x18   : > { %s783_s22 = smov 4   ;;  %164 = sbr.rel (%p855_p8) target bundleno = 339 (0x153), region = 28 }
  0x19   : > { %575 = dma.hbm_to_vmem [thread:$0]  (!%p866_p12), %s151_s7, 2048, %s153_s9, %s140_s20, %s782_s21, %s782_s21, %s783_s22  }
  0x1d   : > { %746 = dma.done.wait (%p836_p3), [#allocation3], 128  }
  0x1e   : > { %748 = vsyncadd (%p836_p3), [#allocation3], 4294967168  ;;  %s171_s16 = sand.u32 1, %s763_s10  }
  0x1f   : > { %s454_s24 = sshll.u32 %s171_s16, 7  ;;  %s172_s25 = scalar_lea.sflag [#allocation6], %s171_s16 }
  0x20   : > { %s894_s29 = scalar_lea.vmem [#allocation5], %s454_s24 }
  0x21   : > { %750 = dma.done.wait (%p847_p6), %s172_s25, 2048  }
  0x22   : > { %752 = vsyncadd (%p847_p6), %s172_s25, 4294965248  ;;  %p455_p1 = scmp.ne.s32.totalorder %s771_s12, 0 }
  0x24   : > { %196 = sbr.rel (%p455_p1) target bundleno = 43 (0x2b), region = 40 }
  0x29   : > { %v197_v0 = vld [vmem:[#allocation2] sm:$0xff] }
  0x2a   : > { %198 = vst [vmem:[#allocation7] sm:$0xff] %v197_v0 }
  0x2b PF: > { %v549_v1 = vld [vmem:[%s894_s29 + $0x38] sm:$0xff]  ;;  %v548_v2 = vld [vmem:[%s894_s29 + $0x30] sm:$0xff]  ;;  %v547_v5 = vld [vmem:[%s894_s29 + $0x28] sm:$0xff]  ;;  %s784_s12 = smov [#allocation7]   ;;  %s368_s26 = sshll.u32 %s942_s2, 4  ;;  %s369_s26 = int_to_ptr.hbm [resolvable:$true] %s368_s26 }
  0x2c   : > { %265 = vmatpush.bf16.msra.mxu0 %v549_v1  ;;  %v557_v3 = vld [vmem:[%s894_s29 + $0x78] sm:$0xff]  ;;  %v556_v4 = vld [vmem:[%s894_s29 + $0x70] sm:$0xff]  ;;  %v555_v6 = vld [vmem:[%s894_s29 + $0x68] sm:$0xff]  ;;  %s366_s17 = sshll.u32 %s784_s12, 4  ;;  %p579_p2 = scmp.eq.s32.totalorder %s444_s15, 1  ;;  %s367_s17 = int_to_ptr.vmem [resolvable:$true] %s366_s17 }
  0x2d   : > { %344 = vmatpush.bf16.msra.mxu1 %v557_v3  ;;  %v546_v7 = vld [vmem:[%s894_s29 + $0x20] sm:$0xff]  ;;  %v545_v9 = vld [vmem:[%s894_s29 + $0x18] sm:$0xff]  ;;  %v544_v11 = vld [vmem:[%s894_s29 + $0x10] sm:$0xff] }
  0x2e   : > { %v554_v8 = vld [vmem:[%s894_s29 + $0x60] sm:$0xff]  ;;  %v553_v10 = vld [vmem:[%s894_s29 + $0x58] sm:$0xff]  ;;  %v552_v12 = vld [vmem:[%s894_s29 + $0x50] sm:$0xff] }
  0x2f   : > { %v543_v13 = vld [vmem:[%s894_s29 + $0x8] sm:$0xff]  ;;  %v542_v15 = vld [vmem:[%s894_s29] sm:$0xff] }
  0x30   : > { %266 = vmatpush.bf16.msra.mxu0 %v548_v2  ;;  %v551_v14 = vld [vmem:[%s894_s29 + $0x48] sm:$0xff]  ;;  %v550_v18 = vld [vmem:[%s894_s29 + $0x40] sm:$0xff] }
  0x31   : > { %345 = vmatpush.bf16.msra.mxu1 %v556_v4  ;;  %v199_v16 = vld [vmem:[#allocation7] sm:$0xff] }
  0x32   : > { %v200_v17 = vpack.c.bf16 %v199_v16, %v199_v16 }
  0x34   : > { %267 = vmatpush.bf16.msra.mxu0 %v547_v5 }
  0x35   : > { %346 = vmatpush.bf16.msra.mxu1 %v555_v6 }
  0x38   : > { %268 = vmatpush.bf16.msra.mxu0 %v546_v7 }
  0x39   : > { %347 = vmatpush.bf16.msra.mxu1 %v554_v8 }
  0x3c   : > { %269 = vmatpush.bf16.msra.mxu0 %v545_v9 }
  0x3d   : > { %348 = vmatpush.bf16.msra.mxu1 %v553_v10 }
  0x40   : > { %270 = vmatpush.bf16.msra.mxu0 %v544_v11 }
  0x41   : > { %349 = vmatpush.bf16.msra.mxu1 %v552_v12 }
  0x44   : > { %271 = vmatpush.bf16.msra.mxu0 %v543_v13 }
  0x45   : > { %350 = vmatpush.bf16.msra.mxu1 %v551_v14 }
  0x48   : > { %272 = vmatpush.bf16.msra.mxu0 %v542_v15 }
  0x49   : > { %351 = vmatpush.bf16.msra.mxu1 %v550_v18 }
  0x4b   : > { %273 = vmatmul.bf16.vlgmr.msra.gmra.mxu0 %v200_v17 }
  0xc8   : > { %v274_v19 = vpop.f32.mrf.mxu0 }
  0xc9   : > { %v278_v20 = vpack.c.bf16 %v274_v19, %v274_v19 }
  0xcb   : > { %352 = vmatmul.bf16.vlgmr.msra.gmra.mxu1 %v278_v20 }
  0xd0   : > { %v276_v21 = vpop.f32.mrf.mxu0 }
 0x148   : > { %v353_v22 = vpop.f32.mrf.mxu1 }
 0x149   : > { %357 = vst [vmem:[#allocation7] sm:$0xff] %v353_v22 }
 0x14a   : > { %565 = dma.vmem_to_hbm [thread:$0]  (%p579_p2), %s367_s17, 128, %s369_s26, [#allocation4]  }
 0x150   : > { %v355_v23 = vpop.f32.mrf.mxu1 }
 0x151   : > { %754 = dma.done.wait (%p579_p2), [#allocation4], 128  }
 0x152   : > { %756 = vsyncadd (%p579_p2), [#allocation4], 4294967168 }
 0x153 PF: > { %s17_s14 = sadd.s32 1, %s779_s14   ;;  %s948_s9 = smov %s763_s10 }
 0x154   : > { %p14_p3 = scmp.ge.s32.totalorder %s17_s14, 4   ;;  %s949_s10 = smov %s767_s11 }
 0x155   : > { %s950_s11 = smov %s883_s18  ;;  %s951_s12 = smov %s775_s13 }
 0x156   : > { %s952_s13 = smov %s954_s27  ;;  %16 = sbr.rel (!%p14_p3) target bundleno = 6 (0x6), region = 77 }
 0x15b   :  { %382 = vsyncpa [#allocation3], 1 }
 0x15c   :  { %384 = vsyncpa [#allocation3 + $0x1], 1 }
 0x15d   :  { %385 = vsyncpa [#allocation6], 1 }
 0x15e   :  { %387 = vsyncpa [#allocation6 + $0x1], 1 }
 0x15f   :  { %388 = vsyncpa [#allocation4], 1 }
 0x160   :  { %390 = vsyncpa [#allocation4 + $0x1], 1 }

</bundles_post_ra>
